<compile_context>
chip_gen: v6e
topology: v6e:2x2x1
jax: 0.10.0
libtpu: 0.0.40
codegen_flags: <defaults>
</compile_context>

<pallas_src>
import functools
import math

import jax
import jax.numpy as jnp
from jax.experimental import pallas as pl
from jax.experimental.pallas import tpu as pltpu


_HAS_BUFFERED = hasattr(pl, "Buffered")


def _round_up(x, m):
    return ((x + m - 1) // m) * m


def _xavier_uniform(key, shape, fan_in, fan_out, dtype=jnp.float32):
    """Deterministic Xavier/Glorot uniform init (matches torch semantics)."""
    bound = math.sqrt(6.0 / (fan_in + fan_out))
    return jax.random.uniform(key, shape, dtype=dtype, minval=-bound, maxval=bound)


def _const_spec(block_shape, index_map, single_buffer):
    """BlockSpec for an input whose block index never changes across the grid.

    With single_buffer=True the default double-buffer (a pure VMEM waste for a
    constant-index input, e.g. an extra HxH weight copy) is dropped via
    pipeline_mode=pl.Buffered(1)."""
    if single_buffer and _HAS_BUFFERED:
        return pl.BlockSpec(block_shape, index_map,
                            pipeline_mode=pl.Buffered(buffer_count=1))
    return pl.BlockSpec(block_shape, index_map)


def _vmem_limit_bytes(budget_bytes):
    """Explicit scoped-VMEM request: 2x the computed budget + headroom, capped
    at the chip's physical VMEM."""
    try:
        cap = int(pltpu.get_tpu_info().vmem_capacity_bytes)
    except Exception:
        cap = 64 << 20  # v7x physical VMEM per TC; safe lower bound elsewhere.
    want = int(budget_bytes) * 2 + (4 << 20)
    return max(16 << 20, min(want, cap))


def _default_num_cores():
    """v7x has 2 TensorCores per chip; earlier generations have 1."""
    try:
        kind = jax.devices()[0].device_kind.lower()
        if "v7" in kind:
            return 2
    except Exception:
        pass
    return 1


# ---------------------------------------------------------------------------
# Kernel 1: hoisted input projection  P = X @ Wx + (bx + bh)   (time-major X)
# ---------------------------------------------------------------------------
def _proj_kernel(x_ref, wx_ref, b_ref, p_ref):
    acc = jnp.dot(x_ref[...], wx_ref[...], preferred_element_type=jnp.float32)
    p_ref[...] = (acc + b_ref[...]).astype(p_ref.dtype)


def _input_projection(x2d, wx, b_xh, out_dtype, single_buffer):
    """(M, D) @ (D, H) + fused bias, tiled over rows (and over H when large)."""
    M, D = x2d.shape
    H = wx.shape[1]

    # Row (M) tiling: pad to a sublane multiple; never pull the whole ragged
    # input/output resident.
    if M <= 512:
        TM = _round_up(M, 8)
    else:
        TM = 512
    M_pad = _round_up(M, TM)
    if M_pad != M:
        x2d = jnp.pad(x2d, ((0, M_pad - M), (0, 0)))

    # Column (N == H) tiling only when H is large and lane aligned.
    TN = 512 if (H > 512 and H % 128 == 0) else H
    n_m = M_pad // TM
    n_n = pl.cdiv(H, TN)

    # Wx / bias blocks are only truly constant-index when H is not tiled.
    const_sb = single_buffer and (n_n == 1)

    itm_in = x2d.dtype.itemsize
    itm_w = wx.dtype.itemsize
    itm_out = jnp.dtype(out_dtype).itemsize
    budget = (2 * TM * D * itm_in
              + (1 if const_sb else 2) * D * TN * itm_w
              + 2 * TN * 4
              + 2 * TM * TN * itm_out)

    p = pl.pallas_call(
        _proj_kernel,
        out_shape=jax.ShapeDtypeStruct((M_pad, H), out_dtype),
        grid_spec=pltpu.PrefetchScalarGridSpec(
            num_scalar_prefetch=0,
            grid=(n_m, n_n),
            in_specs=[
                pl.BlockSpec((TM, D), lambda m, n: (m, 0)),        # rows of X
                _const_spec((D, TN), lambda m, n: (0, n), const_sb),  # Wx
                _const_spec((1, TN), lambda m, n: (0, n), const_sb),  # fused bias
            ],
            out_specs=pl.BlockSpec((TM, TN), lambda m, n: (m, n)),
        ),
        compiler_params=pltpu.CompilerParams(
            dimension_semantics=("parallel", "parallel"),
            vmem_limit_bytes=_vmem_limit_bytes(budget)),
    )(x2d, wx, b_xh)
    return p[:M] if M_pad != M else p


# ---------------------------------------------------------------------------
# Kernel 2: recurrence over time (TT timesteps per grid step) + fc head
# ---------------------------------------------------------------------------
def _recurrence_kernel(p_ref, wh_ref, wf_ref, bf_ref, out_ref, h_ref,
                       *, tt, seq_len, activation, compute_dtype):
    """
    p_ref : (TT, TB, H)  time-major precomputed input projection (compute dtype)
    wh_ref: (H, H)       h2h weight (pre-transposed, compute dtype), VMEM resident
    wf_ref: (H, O)       fc weight (pre-transposed, compute dtype)
    bf_ref: (1, O)       fc bias (f32)
    out_ref:(TB, O)      final output (written on the last time block only)
    h_ref : (TB, H)      VMEM scratch: f32 hidden state carried across time blocks
    """
    t_blk = pl.program_id(1)
    last = pl.num_programs(1) - 1

    @pl.when(t_blk == 0)
    def _():
        h_ref[...] = jnp.zeros_like(h_ref)  # h0 = zeros, as in the PyTorch module

    act = jnp.tanh if activation == "tanh" else (lambda v: jnp.maximum(v, 0.0))
    wh = wh_ref[...]  # resident h2h weight, loaded once per grid step

    def run_steps(masked):
        h = h_ref[...]  # f32 hidden state
        for i in range(tt):
            # Per-step contiguous (TB, H) tile load (time-major P): pure vld,
            # no sublane extraction; only ~TB*H/1024 vregs live at a time.
            p_i = p_ref[i].astype(jnp.float32)
            h_new = act(p_i + jnp.dot(h.astype(compute_dtype), wh,
                                      preferred_element_type=jnp.float32))
            if masked:
                # Tail block only: drop padded timesteps.  Keep select
                # semantics (never arithmetic masking) -- the OOB portion of
                # the tail P block holds unspecified data.
                h = jnp.where(t_blk * tt + i < seq_len, h_new, h)
            else:
                h = h_new
        h_ref[...] = h

    if seq_len % tt != 0:
        # Full blocks run mask-free; only the last block pays the per-step select.
        @pl.when(t_blk < last)
        def _():
            run_steps(False)

        @pl.when(t_blk == last)
        def _():
            run_steps(True)
    else:
        run_steps(False)

    @pl.when(t_blk == last)
    def _():
        out_ref[...] = (jnp.dot(h_ref[...].astype(compute_dtype), wf_ref[...],
                                preferred_element_type=jnp.float32)
                        + bf_ref[...]).astype(out_ref.dtype)


def _forward_impl(x, params, *, activation, time_block, compute_dtype,
                  num_cores, single_buffer):
    B, T, D = x.shape
    wx, bx, wh, bh, wf, bf = params
    H = wx.shape[1]
    O = wf.shape[1]
    cd = jnp.dtype(compute_dtype)

    # Fuse the two hidden biases once, outside the recurrence.
    b_xh = (bx + bh).reshape(1, H).astype(jnp.float32)

    # Time-major input so P lands directly in (T, B, H) layout.  The one-time
    # (B,T,D)->(T,B,D) transpose is a cheap mem-bound XLA op.
    x_tm = jnp.transpose(x, (1, 0, 2)).reshape(T * B, D).astype(cd)

    # 1) Hoisted input projection: one large matmul over all T*B rows.
    p = _input_projection(x_tm, wx.astype(cd), b_xh, cd, single_buffer)
    p = p.reshape(T, B, H)

    # 2) Recurrence: TT timesteps per grid step (amortizes the ~0.35us/step
    #    grid overhead); batch split only on multi-TensorCore chips (v7x).
    TT = min(time_block, T)
    nt = pl.cdiv(T, TT)
    if num_cores > 1 and B % 32 == 0:
        TB = B // 2                         # sublane-aligned (mult of 16) halves
        batch_sem = getattr(pltpu, "CORE_PARALLEL", "parallel")
    else:
        TB = B                              # v5e/v6e: single TC -> no split
        batch_sem = "arbitrary"
    nb = B // TB

    wh_c = wh.astype(cd)
    wf_c = wf.astype(cd)
    bf_f = bf.reshape(1, O).astype(jnp.float32)

    budget = (2 * TT * TB * H * cd.itemsize                        # P blocks
              + (1 if single_buffer else 2) * H * H * cd.itemsize  # Wh
              + (1 if single_buffer else 2) * H * O * cd.itemsize  # Wf
              + 2 * O * 4                                          # bf
              + 2 * TB * O * 4                                     # out
              + TB * H * 4)                                        # h scratch

    kernel = functools.partial(_recurrence_kernel, tt=TT, seq_len=T,
                               activation=activation, compute_dtype=cd)

    out = pl.pallas_call(
        kernel,
        out_shape=jax.ShapeDtypeStruct((B, O), jnp.float32),
        grid_spec=pltpu.PrefetchScalarGridSpec(
            num_scalar_prefetch=0,
            grid=(nb, nt),
            in_specs=[
                pl.BlockSpec((TT, TB, H), lambda b, t: (t, b, 0)),   # P slab
                _const_spec((H, H), lambda b, t: (0, 0), single_buffer),  # Wh
                _const_spec((H, O), lambda b, t: (0, 0), single_buffer),  # Wf
                _const_spec((1, O), lambda b, t: (0, 0), single_buffer),  # fc bias
            ],
            out_specs=pl.BlockSpec((TB, O), lambda b, t: (b, 0)),
            scratch_shapes=[pltpu.VMEM((TB, H), jnp.float32)],
        ),
        compiler_params=pltpu.CompilerParams(
            # time axis is the recurrence (sequential); batch blocks are
            # core-sharded only on 2-TC chips.
            dimension_semantics=(batch_sem, "arbitrary"),
            vmem_limit_bytes=_vmem_limit_bytes(budget)),
    )(p, wh_c, wf_c, bf_f)
    return out


def rnn_forward(x, params, *, activation="tanh", time_block=32,
                compute_dtype=jnp.bfloat16, num_cores=None):
    """x: (B, T, D) float32 -> (B, O) float32 (matches RNN.forward for B > 1)."""
    if num_cores is None:
        num_cores = _default_num_cores()
    kwargs = dict(activation=activation, time_block=time_block,
                  compute_dtype=compute_dtype, num_cores=num_cores)
    try:
        return _forward_impl(x, params, single_buffer=True, **kwargs)
    except Exception:
        # Older JAX without pipeline_mode=pl.Buffered(1): fall back to the
        # default double-buffered plan.
        return _forward_impl(x, params, single_buffer=False, **kwargs)


def init_params(key, input_size, hidden_size, output_size):
    """Deterministic init mirroring RNNCell.init_parameters / nn.Linear shapes.
    Weights are stored transposed: (in_features, out_features)."""
    k1, k2, k3, k4, k5, k6 = jax.random.split(key, 6)
    wx = _xavier_uniform(k1, (hidden_size, input_size), input_size, hidden_size).T
    wh = _xavier_uniform(k2, (hidden_size, hidden_size), hidden_size, hidden_size).T
    wf = _xavier_uniform(k3, (output_size, hidden_size), hidden_size, output_size).T
    bx = _xavier_uniform(k4, (1, hidden_size), 1, hidden_size)
    bh = _xavier_uniform(k5, (1, hidden_size), 1, hidden_size)
    bf = _xavier_uniform(k6, (1, output_size), 1, output_size)
    return (wx, bx, wh, bh, wf, bf)


def rnn_reference(x, params, activation="tanh"):
    """Pure-JAX reference of the PyTorch forward, for a sanity check."""
    wx, bx, wh, bh, wf, bf = params
    B, T, _ = x.shape
    act = jnp.tanh if activation == "tanh" else (lambda v: jnp.maximum(v, 0.0))
    h = jnp.zeros((B, wx.shape[1]), jnp.float32)
    for t in range(T):
        h = act(x[:, t, :] @ wx + bx + h @ wh + bh)
    return h @ wf + bf


if __name__ == "__main__":
    # Small shapes consistent with the module's forward:
    # input (batch, seq, input_size) -> output (batch, output_size)
    batch, seq, input_size, hidden_size, output_size = 2, 8, 4, 32, 8

    key = jax.random.PRNGKey(0)
    kx, kp = jax.random.split(key)
    x = jax.random.normal(kx, (batch, seq, input_size), dtype=jnp.float32)
    params = init_params(kp, input_size, hidden_size, output_size)

    ref_tanh = rnn_reference(x, params, activation="tanh")
    ref_relu = rnn_reference(x, params, activation="relu")

    # Exact-math path (f32 matmuls) -> tight tolerance.
    out_f32 = jax.block_until_ready(
        rnn_forward(x, params, compute_dtype=jnp.float32))
    assert out_f32.shape == (batch, output_size)
    assert jnp.allclose(out_f32, ref_tanh, atol=1e-5, rtol=1e-5), "f32 tanh mismatch"

    out_relu = jax.block_until_ready(
        rnn_forward(x, params, activation="relu", compute_dtype=jnp.float32))
    assert jnp.allclose(out_relu, ref_relu, atol=1e-5, rtol=1e-5), "f32 relu mismatch"

    # Default bf16-matmul path (native MXU rate); f32 accumulation + f32 hidden
    # state keep drift small -> loose tolerance vs the f32 reference.
    out_bf16 = jax.block_until_ready(rnn_forward(x, params))
    assert out_bf16.shape == (batch, output_size)
    assert jnp.allclose(out_bf16, ref_tanh, atol=1e-1, rtol=1e-1), "bf16 mismatch"

    # TODO(synk): the torch module's `.squeeze()` only matters for batch==1;
    # this kernel keeps the (B, O) output shape (matches the module for B > 1).
    print("KERNEL_OK")
</pallas_src>

<mosaic_0001>
module attributes {stable_mosaic.version = 11 : i64} {
  func.func @_proj_kernel(%arg0: i32, %arg1: i32, %arg2: memref<16x4xf32, #tpu.memory_space<vmem>>, %arg3: memref<4x32xf32, #tpu.memory_space<vmem>>, %arg4: memref<1x32xf32, #tpu.memory_space<vmem>>, %arg5: memref<16x32xf32, #tpu.memory_space<vmem>>) attributes {dimension_semantics = [#tpu.dimension_semantics<parallel>, #tpu.dimension_semantics<parallel>], iteration_bounds = array<i64: 1, 1>, scalar_prefetch = 0 : i64, scratch_operands = 0 : i64, tpu.core_type = #tpu.core_type<tc>, window_params = [{transform_indices = @transform_0, window_bounds = array<i64: 16, 4>}, {pipeline_mode = #tpu.pipeline_mode<synchronous>, transform_indices = @transform_1, window_bounds = array<i64: 4, 32>}, {pipeline_mode = #tpu.pipeline_mode<synchronous>, transform_indices = @transform_2, window_bounds = array<i64: 1, 32>}, {transform_indices = @transform_3, window_bounds = array<i64: 16, 32>}]} {
    %c0 = arith.constant 0 : index
    %c0_0 = arith.constant 0 : index
    %0 = vector.load %arg2[%c0, %c0_0] : memref<16x4xf32, #tpu.memory_space<vmem>>, vector<16x4xf32>
    %c0_1 = arith.constant 0 : index
    %c0_2 = arith.constant 0 : index
    %1 = vector.load %arg3[%c0_1, %c0_2] : memref<4x32xf32, #tpu.memory_space<vmem>>, vector<4x32xf32>
    %cst = arith.constant dense<0.000000e+00> : vector<16x32xf32>
    %2 = tpu.matmul %0, %1, %cst {dimension_numbers = #tpu.dot_dimension_numbers<[1], [0], [0], [1], [0, 0, 1, 1], [], []>} : vector<16x4xf32>, vector<4x32xf32>, vector<16x32xf32> -> vector<16x32xf32>
    %c0_3 = arith.constant 0 : index
    %c0_4 = arith.constant 0 : index
    %3 = vector.load %arg4[%c0_3, %c0_4] : memref<1x32xf32, #tpu.memory_space<vmem>>, vector<1x32xf32>
    %4 = vector.broadcast %3 : vector<1x32xf32> to vector<16x32xf32>
    %5 = arith.addf %2, %4 : vector<16x32xf32>
    %c0_5 = arith.constant 0 : index
    %c0_6 = arith.constant 0 : index
    %6 = vector.load %arg5[%c0_5, %c0_6] : memref<16x32xf32, #tpu.memory_space<vmem>>, vector<16x32xf32>
    tpu.vector_store %arg5[%c0_5, %c0_6], %5 {strides = array<i32>} : memref<16x32xf32, #tpu.memory_space<vmem>>, vector<16x32xf32>,
    return
  }
  func.func @transform_0(%arg0: i32, %arg1: i32) -> (i32, i32) {
    %c0_i32 = arith.constant 0 : i32
    %c0_i32_0 = arith.constant 0 : i32
    return %arg0, %c0_i32 : i32, i32
  }
  func.func @transform_1(%arg0: i32, %arg1: i32) -> (i32, i32) {
    %c0_i32 = arith.constant 0 : i32
    %c0_i32_0 = arith.constant 0 : i32
    return %c0_i32, %arg1 : i32, i32
  }
  func.func @transform_2(%arg0: i32, %arg1: i32) -> (i32, i32) {
    %c0_i32 = arith.constant 0 : i32
    %c0_i32_0 = arith.constant 0 : i32
    return %c0_i32, %arg1 : i32, i32
  }
  func.func @transform_3(%arg0: i32, %arg1: i32) -> (i32, i32) {
    %c0_i32 = arith.constant 0 : i32
    return %arg0, %arg1 : i32, i32
  }
}

module attributes {stable_mosaic.version = 11 : i64} {
  func.func @_proj_kernel(%arg0: i32, %arg1: i32, %arg2: memref<16x4xf32, #tpu.memory_space<vmem>>, %arg3: memref<4x32xf32, #tpu.memory_space<vmem>>, %arg4: memref<1x32xf32, #tpu.memory_space<vmem>>, %arg5: memref<16x32xf32, #tpu.memory_space<vmem>>) attributes {dimension_semantics = [#tpu.dimension_semantics<parallel>, #tpu.dimension_semantics<parallel>], iteration_bounds = array<i64: 1, 1>, scalar_prefetch = 0 : i64, scratch_operands = 0 : i64, tpu.core_type = #tpu.core_type<tc>, window_params = [{transform_indices = @transform_0, window_bounds = array<i64: 16, 4>}, {transform_indices = @transform_1, window_bounds = array<i64: 4, 32>}, {transform_indices = @transform_2, window_bounds = array<i64: 1, 32>}, {transform_indices = @transform_3, window_bounds = array<i64: 16, 32>}]} {
    %c0 = arith.constant 0 : index
    %c0_0 = arith.constant 0 : index
    %0 = vector.load %arg2[%c0, %c0_0] : memref<16x4xf32, #tpu.memory_space<vmem>>, vector<16x4xf32>
    %c0_1 = arith.constant 0 : index
    %c0_2 = arith.constant 0 : index
    %1 = vector.load %arg3[%c0_1, %c0_2] : memref<4x32xf32, #tpu.memory_space<vmem>>, vector<4x32xf32>
    %cst = arith.constant dense<0.000000e+00> : vector<16x32xf32>
    %2 = tpu.matmul %0, %1, %cst {dimension_numbers = #tpu.dot_dimension_numbers<[1], [0], [0], [1], [0, 0, 1, 1], [], []>} : vector<16x4xf32>, vector<4x32xf32>, vector<16x32xf32> -> vector<16x32xf32>
    %c0_3 = arith.constant 0 : index
    %c0_4 = arith.constant 0 : index
    %3 = vector.load %arg4[%c0_3, %c0_4] : memref<1x32xf32, #tpu.memory_space<vmem>>, vector<1x32xf32>
    %4 = vector.broadcast %3 : vector<1x32xf32> to vector<16x32xf32>
    %5 = arith.addf %2, %4 : vector<16x32xf32>
    %c0_5 = arith.constant 0 : index
    %c0_6 = arith.constant 0 : index
    %6 = vector.load %arg5[%c0_5, %c0_6] : memref<16x32xf32, #tpu.memory_space<vmem>>, vector<16x32xf32>
    tpu.vector_store %arg5[%c0_5, %c0_6], %5 {strides = array<i32>} : memref<16x32xf32, #tpu.memory_space<vmem>>, vector<16x32xf32>,
    return
  }
  func.func @transform_0(%arg0: i32, %arg1: i32) -> (i32, i32) {
    %c0_i32 = arith.constant 0 : i32
    %c0_i32_0 = arith.constant 0 : i32
    return %arg0, %c0_i32 : i32, i32
  }
  func.func @transform_1(%arg0: i32, %arg1: i32) -> (i32, i32) {
    %c0_i32 = arith.constant 0 : i32
    %c0_i32_0 = arith.constant 0 : i32
    return %c0_i32, %arg1 : i32, i32
  }
  func.func @transform_2(%arg0: i32, %arg1: i32) -> (i32, i32) {
    %c0_i32 = arith.constant 0 : i32
    %c0_i32_0 = arith.constant 0 : i32
    return %c0_i32, %arg1 : i32, i32
  }
  func.func @transform_3(%arg0: i32, %arg1: i32) -> (i32, i32) {
    %c0_i32 = arith.constant 0 : i32
    return %arg0, %arg1 : i32, i32
  }
}

</mosaic_0001>

<bundles_post_ra>
// kernel: tpu_custom_call.1
= control target key start
LH: loop header
LB: loop body
LE: loop exit
PB: predicated region body
PF: predicated region fallthrough
CT: control target
= control target key end

     0   :  { %vm32_vm0 = vcmask 1043456   ;;  %vm25_vm1 = vcmask 31744   ;;  %s205_s0 = inlined_call_operand.vmem [shape: f32[16,4], index: 0, kind: input, shape index: {}]   ;;  %s206_s1 = inlined_call_operand.vmem [shape: f32[4,32], index: 1, kind: input, shape index: {}]   ;;  %s207_s2 = inlined_call_operand.vmem [shape: f32[1,32], index: 2, kind: input, shape index: {}]   ;;  %s208_s3 = inlined_call_operand.hbm [shape: f32[16,32], index: 3, kind: output, shape index: {}]  }
   0x1   :  { %v17_v0 = vld [vmem:[%s206_s1] sm:$0xf]  ;;  %v16_v2 = vld [vmem:[%s205_s0 + $0x8] sm:$0xff] }
   0x2   :  { %v15_v1 = vld [vmem:[%s205_s0] sm:$0xff]  ;;  %137 = vmatprep.subr.msk.mxu0 %vm32_vm0, %v17_v0 }
   0x3   :  { %139 = vmatprep.mubr.msk.f32.mxu0 %vm25_vm1, %v15_v1 }
   0x4   :  { %8 = vsyncpa [#allocation3], 0  ;;  %138 = vmatpush3.msk.msra.mxu0 %vm32_vm0, %v17_v0  ;;  %v130_v3 = vld [vmem:[%s207_s2] ss:$0 sm:$0xff]  ;;  %s167_s1 = smov [#allocation2]   ;;  %vm111_vm2 = vcmask 261120  }
   0x5   :  { %140 = vmatmul.mubr.msk.f32.vlgmr.msra.gmra.mxu0 %vm25_vm1, %v16_v2  ;;  %s119_s20 = sshll.u32 %s167_s1, 4  ;;  %s120_s20 = int_to_ptr.vmem [resolvable:$true] %s119_s20 }
   0x6   :  { %s145_s0 = scalar_lea.vmem %s120_s20, 256  ;;  %p150_p1 = scmp.lt.s32.totalorder %s120_s20, %s120_s20 }
   0x7   :  { %p146_p0 = scmp.ne.s32.totalorder %s120_s20, %s145_s0  ;;  %p151_p2 = scmp.lt.s32.totalorder %s145_s0, %s145_s0 }
   0x9   :  { %p152_p3 = por %p151_p2, %p150_p1 }
   0xb   :  { %p153_p4 = pnand %p152_p3, %p146_p0 }
  0xc5   :  { %v141_v4 = vpop.f32.mrf.mxu0 }
  0xc6   :  { %v108_v5 = vadd.f32 %v141_v4, %v130_v3 }
  0xc7   :  { %v102_v6 = vpop.f32.mrf.mxu0 }
  0xc8   :  { %113 = vst.msk [vmem:[#allocation2 + $0x8] sm:$0xff] %vm111_vm2, %v108_v5  ;;  %v103_v7 = vadd.f32 %v130_v3, %v102_v6 }
  0xca   :  { %112 = vst.msk [vmem:[#allocation2] sm:$0xff] %vm111_vm2, %v103_v7 }
  0xcb   :  { %156 = shalt.err (!%p153_p4)
}
  0xcc   :  { %s168_s21 = smov 128   ;;  %s169_s22 = smov 8  }
  0xcd   :  { %125 = dma.vmem_to_hbm [thread:$0]  %s120_s20, 256, %s208_s3, [#allocation3], %s168_s21, %s168_s21, %s169_s22  }
  0xce   :  { %165 = dma.done.wait [#allocation3], 256  }
  0xcf   :  { %166 = vsyncadd [#allocation3], 4294967040 }
  0xd0   :  { %129 = vsyncpa [#allocation3], 1 }

// kernel: tpu_custom_call.1
= control target key start
LH: loop header
LB: loop body
LE: loop exit
PB: predicated region body
PF: predicated region fallthrough
CT: control target
= control target key end

     0   :  { %vm32_vm0 = vcmask 1043456   ;;  %vm25_vm1 = vcmask 31744   ;;  %s205_s0 = inlined_call_operand.vmem [shape: f32[16,4], index: 0, kind: input, shape index: {}]   ;;  %s206_s1 = inlined_call_operand.vmem [shape: f32[4,32], index: 1, kind: input, shape index: {}]   ;;  %s207_s2 = inlined_call_operand.vmem [shape: f32[1,32], index: 2, kind: input, shape index: {}]   ;;  %s208_s3 = inlined_call_operand.hbm [shape: f32[16,32], index: 3, kind: output, shape index: {}]  }
   0x1   :  { %v17_v0 = vld [vmem:[%s206_s1] sm:$0xf]  ;;  %v16_v2 = vld [vmem:[%s205_s0 + $0x8] sm:$0xff] }
   0x2   :  { %v15_v1 = vld [vmem:[%s205_s0] sm:$0xff]  ;;  %137 = vmatprep.subr.msk.mxu0 %vm32_vm0, %v17_v0 }
   0x3   :  { %139 = vmatprep.mubr.msk.f32.mxu0 %vm25_vm1, %v15_v1 }
   0x4   :  { %8 = vsyncpa [#allocation3], 0  ;;  %138 = vmatpush3.msk.msra.mxu0 %vm32_vm0, %v17_v0  ;;  %v130_v3 = vld [vmem:[%s207_s2] ss:$0 sm:$0xff]  ;;  %s167_s1 = smov [#allocation2]   ;;  %vm111_vm2 = vcmask 261120  }
   0x5   :  { %140 = vmatmul.mubr.msk.f32.vlgmr.msra.gmra.mxu0 %vm25_vm1, %v16_v2  ;;  %s119_s20 = sshll.u32 %s167_s1, 4  ;;  %s120_s20 = int_to_ptr.vmem [resolvable:$true] %s119_s20 }
   0x6   :  { %s145_s0 = scalar_lea.vmem %s120_s20, 256  ;;  %p150_p1 = scmp.lt.s32.totalorder %s120_s20, %s120_s20 }
   0x7   :  { %p146_p0 = scmp.ne.s32.totalorder %s120_s20, %s145_s0  ;;  %p151_p2 = scmp.lt.s32.totalorder %s145_s0, %s145_s0 }
   0x9   :  { %p152_p3 = por %p151_p2, %p150_p1 }
   0xb   :  { %p153_p4 = pnand %p152_p3, %p146_p0 }
  0xc5   :  { %v141_v4 = vpop.f32.mrf.mxu0 }
  0xc6   :  { %v108_v5 = vadd.f32 %v141_v4, %v130_v3 }
  0xc7   :  { %v102_v6 = vpop.f32.mrf.mxu0 }
  0xc8   :  { %113 = vst.msk [vmem:[#allocation2 + $0x8] sm:$0xff] %vm111_vm2, %v108_v5  ;;  %v103_v7 = vadd.f32 %v130_v3, %v102_v6 }
  0xca   :  { %112 = vst.msk [vmem:[#allocation2] sm:$0xff] %vm111_vm2, %v103_v7 }
  0xcb   :  { %156 = shalt.err (!%p153_p4)
}
  0xcc   :  { %s168_s21 = smov 128   ;;  %s169_s22 = smov 8  }
  0xcd   :  { %125 = dma.vmem_to_hbm [thread:$0]  %s120_s20, 256, %s208_s3, [#allocation3], %s168_s21, %s168_s21, %s169_s22  }
  0xce   :  { %165 = dma.done.wait [#allocation3], 256  }
  0xcf   :  { %166 = vsyncadd [#allocation3], 4294967040 }
  0xd0   :  { %129 = vsyncpa [#allocation3], 1 }

</bundles_post_ra>
